<compile_context>
chip_gen: v7x
topology: tpu7x:2x2x1
jax: 0.10.0
libtpu: 0.0.40
codegen_flags: <defaults>
</compile_context>

<pallas_src>
import functools

import jax
import jax.numpy as jnp
from jax.experimental import pallas as pl
from jax.experimental.pallas import tpu as pltpu


_LANES = 128
_DEFAULT_MAX_BLOCK_ROWS = 4096  # (4096,128) f32 = 2 MiB per input block


def _eucloss_kernel(y_ref, yp_ref, out_ref, acc_t, acc_r, *,
                    d, n_trans, n_valid, block_rows,
                    n_t_total, n_r_total, beta):
    """Accumulate masked L1 partial sums; finalize loss on the last grid step."""
    pid = pl.program_id(0)

    @pl.when(pid == 0)
    def _init():
        acc_t[...] = jnp.zeros_like(acc_t)
        acc_r[...] = jnp.zeros_like(acc_r)

    # abs-diff in the input dtype, accumulate in f32.
    diff = jnp.abs(y_ref[...] - yp_ref[...]).astype(jnp.float32)

    # Global flat index of every element of this block (row-major over [B, D]).
    row = jax.lax.broadcasted_iota(jnp.int32, diff.shape, 0)
    lane = jax.lax.broadcasted_iota(jnp.int32, diff.shape, 1)
    flat = (pid * block_rows + row) * _LANES + lane

    valid = flat < n_valid          # masks zero-pad tail AND stale partial-block rows
    col = flat % d                  # original feature column
    t_mask = valid & (col < n_trans)
    r_mask = valid & (col >= n_trans)

    # Sublane (row) reduction per step -> (1,128) lane partials, accumulated
    # across grid steps in VMEM scratch.
    acc_t[...] += jnp.sum(jnp.where(t_mask, diff, 0.0), axis=0, keepdims=True)
    acc_r[...] += jnp.sum(jnp.where(r_mask, diff, 0.0), axis=0, keepdims=True)

    @pl.when(pid == pl.num_programs(0) - 1)
    def _finalize():
        loss_t = jnp.sum(acc_t[...]) / n_t_total
        loss_r = jnp.sum(acc_r[...]) / n_r_total
        loss = loss_t + beta * loss_r
        # Pack the three scalars into a full, unmasked (8,128) store.
        sub = jax.lax.broadcasted_iota(jnp.int32, (8, _LANES), 0)
        ln = jax.lax.broadcasted_iota(jnp.int32, (8, _LANES), 1)
        row0 = sub == 0
        tile = jnp.where(row0 & (ln == 0), loss,
               jnp.where(row0 & (ln == 1), loss_t,
               jnp.where(row0 & (ln == 2), loss_r, 0.0)))
        out_ref[...] = tile


def euc_loss(y, y_pred, beta=500.0, *, max_block_rows=_DEFAULT_MAX_BLOCK_ROWS):
    """Pallas implementation of EucLoss.forward.

    Returns (loss, loss_t, loss_r) as JAX f32 scalars.
    """
    assert y.shape == y_pred.shape and y.ndim == 2
    B, D = y.shape
    assert D >= 5, "EucLoss needs >=1 translation column + 4 rotation columns"
    n_trans = D - 4
    N = B * D

    # Flatten (free for row-major [B, D]) and zero-pad to a multiple of 128 so
    # the data can be viewed as a lane-dense (R, 128) slab.
    R = pl.cdiv(N, _LANES)
    pad = R * _LANES - N
    yf = jnp.reshape(y, (N,))
    ypf = jnp.reshape(y_pred, (N,))
    if pad:
        yf = jnp.pad(yf, (0, pad))
        ypf = jnp.pad(ypf, (0, pad))
    y2 = jnp.reshape(yf, (R, _LANES))
    yp2 = jnp.reshape(ypf, (R, _LANES))

    # Row tiling: full slab for small inputs, else fat multiple-of-8 blocks.
    max_rows = max(8, (int(max_block_rows) // 8) * 8)
    tb = R if R <= max_rows else max_rows
    nb = pl.cdiv(R, tb)

    kernel = functools.partial(
        _eucloss_kernel,
        d=D, n_trans=n_trans, n_valid=N, block_rows=tb,
        n_t_total=float(B * n_trans), n_r_total=float(B * 4), beta=float(beta),
    )

    out = pl.pallas_call(
        kernel,
        out_shape=jax.ShapeDtypeStruct((8, _LANES), jnp.float32),
        grid=(nb,),
        in_specs=[
            pl.BlockSpec((tb, _LANES), lambda i: (i, 0)),
            pl.BlockSpec((tb, _LANES), lambda i: (i, 0)),
        ],
        out_specs=pl.BlockSpec((8, _LANES), lambda i: (0, 0)),
        scratch_shapes=[
            pltpu.VMEM((1, _LANES), jnp.float32),  # translation lane partials
            pltpu.VMEM((1, _LANES), jnp.float32),  # rotation lane partials
        ],
        compiler_params=pltpu.CompilerParams(
            dimension_semantics=("arbitrary",),
        ),
    )(y2, yp2)

    return out[0, 0], out[0, 1], out[0, 2]


def _check(B, D, key, beta=500.0, max_block_rows=_DEFAULT_MAX_BLOCK_ROWS):
    k1, k2 = jax.random.split(key)
    y = jax.random.normal(k1, (B, D), dtype=jnp.float32)
    y_pred = jax.random.normal(k2, (B, D), dtype=jnp.float32)

    loss, loss_t, loss_r = euc_loss(y, y_pred, beta=beta,
                                    max_block_rows=max_block_rows)
    jax.block_until_ready(loss)

    ref_t = float(jnp.mean(jnp.abs(y[:, :-4] - y_pred[:, :-4])))
    ref_r = float(jnp.mean(jnp.abs(y[:, -4:] - y_pred[:, -4:])))
    ref_loss = ref_t + beta * ref_r

    def close(a, b, rtol=1e-4, atol=1e-5):
        return abs(a - b) <= atol + rtol * abs(b)

    assert close(float(loss), ref_loss), (float(loss), ref_loss)
    assert close(float(loss_t), ref_t), (float(loss_t), ref_t)
    assert close(float(loss_r), ref_r), (float(loss_r), ref_r)


if __name__ == "__main__":
    key = jax.random.PRNGKey(0)
    k1, k2, k3 = jax.random.split(key, 3)

    # Pose-regression style shapes: 3 translation dims + 4 quaternion dims.
    _check(B=8, D=7, key=k1)                        # tiny: single block, padded
    _check(B=2050, D=7, key=k2)                     # single fat block, masked tail
    _check(B=2050, D=7, key=k3, max_block_rows=32)  # multi-block accumulator path

    print("KERNEL_OK")
</pallas_src>

<mosaic_0001>
module attributes {stable_mosaic.version = 11 : i64} {
  func.func @_eucloss_kernel(%arg0: i32, %arg1: memref<1x128xf32, #tpu.memory_space<vmem>>, %arg2: memref<1x128xf32, #tpu.memory_space<vmem>>, %arg3: memref<8x128xf32, #tpu.memory_space<vmem>>, %arg4: memref<1x128xf32, #tpu.memory_space<vmem>>, %arg5: memref<1x128xf32, #tpu.memory_space<vmem>>) attributes {dimension_semantics = [#tpu.dimension_semantics<arbitrary>], iteration_bounds = array<i64: 1>, scalar_prefetch = 0 : i64, scratch_operands = 2 : i64, tpu.core_type = #tpu.core_type<tc>, window_params = [{transform_indices = @transform_0, window_bounds = array<i64: 1, 128>}, {transform_indices = @transform_1, window_bounds = array<i64: 1, 128>}, {pipeline_mode = #tpu.pipeline_mode<synchronous>, transform_indices = @transform_2, window_bounds = array<i64: 8, 128>}]} {
    %c0_i32 = arith.constant 0 : i32
    %0 = arith.cmpi eq, %arg0, %c0_i32 : i32
    %1 = arith.extui %0 : i1 to i32
    %c0_i32_0 = arith.constant 0 : i32
    %2 = arith.cmpi ne, %1, %c0_i32_0 : i32
    scf.if %2 {
      %cst_23 = arith.constant 0.000000e+00 : f32
      %56 = vector.broadcast %cst_23 : f32 to vector<1x128xf32>
      %c0_24 = arith.constant 0 : index
      %c0_25 = arith.constant 0 : index
      %57 = vector.load %arg4[%c0_24, %c0_25] : memref<1x128xf32, #tpu.memory_space<vmem>>, vector<1x128xf32>
      tpu.vector_store %arg4[%c0_24, %c0_25], %56 {strides = array<i32>} : memref<1x128xf32, #tpu.memory_space<vmem>>, vector<1x128xf32>,
      %cst_26 = arith.constant 0.000000e+00 : f32
      %58 = vector.broadcast %cst_26 : f32 to vector<1x128xf32>
      %c0_27 = arith.constant 0 : index
      %c0_28 = arith.constant 0 : index
      %59 = vector.load %arg5[%c0_27, %c0_28] : memref<1x128xf32, #tpu.memory_space<vmem>>, vector<1x128xf32>
      tpu.vector_store %arg5[%c0_27, %c0_28], %58 {strides = array<i32>} : memref<1x128xf32, #tpu.memory_space<vmem>>, vector<1x128xf32>,
    } else {
    }
    %c0 = arith.constant 0 : index
    %c0_1 = arith.constant 0 : index
    %3 = vector.load %arg1[%c0, %c0_1] : memref<1x128xf32, #tpu.memory_space<vmem>>, vector<1x128xf32>
    %c0_2 = arith.constant 0 : index
    %c0_3 = arith.constant 0 : index
    %4 = vector.load %arg2[%c0_2, %c0_3] : memref<1x128xf32, #tpu.memory_space<vmem>>, vector<1x128xf32>
    %5 = arith.subf %3, %4 : vector<1x128xf32>
    %6 = math.absf %5 : vector<1x128xf32>
    %7 = tpu.iota {dimensions = array<i32: 0>} : vector<1x128xi32>
    %8 = tpu.iota {dimensions = array<i32: 1>} : vector<1x128xi32>
    %c1_i32 = arith.constant 1 : i32
    %9 = arith.muli %arg0, %c1_i32 : i32
    %10 = vector.broadcast %9 : i32 to vector<1x128xi32>
    %11 = arith.addi %10, %7 : vector<1x128xi32>
    %c128_i32 = arith.constant 128 : i32
    %12 = vector.broadcast %c128_i32 : i32 to vector<1x128xi32>
    %13 = arith.muli %11, %12 : vector<1x128xi32>
    %14 = arith.addi %13, %8 : vector<1x128xi32>
    %c56_i32 = arith.constant 56 : i32
    %15 = vector.broadcast %c56_i32 : i32 to vector<1x128xi32>
    %16 = arith.cmpi slt, %14, %15 : vector<1x128xi32>
    %c7_i32 = arith.constant 7 : i32
    %c0_i32_4 = arith.constant 0 : i32
    %17 = arith.cmpi eq, %c7_i32, %c0_i32_4 : i32
    %c1_i32_5 = arith.constant 1 : i32
    %18 = arith.select %17, %c1_i32_5, %c7_i32 : i32
    %19 = vector.broadcast %18 : i32 to vector<1x128xi32>
    %20 = arith.remsi %14, %19 : vector<1x128xi32>
    %c0_i32_6 = arith.constant 0 : i32
    %21 = vector.broadcast %c0_i32_6 : i32 to vector<1x128xi32>
    %22 = arith.cmpi ne, %20, %21 : vector<1x128xi32>
    %c0_i32_7 = arith.constant 0 : i32
    %23 = vector.broadcast %c0_i32_7 : i32 to vector<1x128xi32>
    %24 = arith.cmpi slt, %20, %23 : vector<1x128xi32>
    %c0_i32_8 = arith.constant 0 : i32
    %25 = arith.cmpi slt, %18, %c0_i32_8 : i32
    %26 = vector.broadcast %25 : i1 to vector<1x128xi1>
    %27 = vector.broadcast %26 : vector<1x128xi1> to vector<1x128xi1>
    %28 = arith.xori %24, %27 : vector<1x128xi1>
    %29 = arith.andi %28, %22 : vector<1x128xi1>
    %30 = vector.broadcast %18 : i32 to vector<1x128xi32>
    %31 = arith.addi %20, %30 : vector<1x128xi32>
    %32 = arith.select %29, %31, %20 : vector<1x128xi1>, vector<1x128xi32>
    %c3_i32 = arith.constant 3 : i32
    %33 = vector.broadcast %c3_i32 : i32 to vector<1x128xi32>
    %34 = arith.cmpi slt, %32, %33 : vector<1x128xi32>
    %35 = arith.andi %16, %34 : vector<1x128xi1>
    %c3_i32_9 = arith.constant 3 : i32
    %36 = vector.broadcast %c3_i32_9 : i32 to vector<1x128xi32>
    %37 = arith.cmpi sge, %32, %36 : vector<1x128xi32>
    %38 = arith.andi %16, %37 : vector<1x128xi1>
    %c0_10 = arith.constant 0 : index
    %c0_11 = arith.constant 0 : index
    %39 = vector.load %arg4[%c0_10, %c0_11] : memref<1x128xf32, #tpu.memory_space<vmem>>, vector<1x128xf32>
    %cst = arith.constant 0.000000e+00 : f32
    %40 = vector.broadcast %cst : f32 to vector<1x128xf32>
    %41 = arith.select %35, %6, %40 : vector<1x128xi1>, vector<1x128xf32>
    %cst_12 = arith.constant dense<0.000000e+00> : vector<128xf32>
    %42 = vector.multi_reduction <add>, %41, %cst_12 [0] : vector<1x128xf32> to vector<128xf32>
    %43 = vector.shape_cast %42 : vector<128xf32> to vector<1x128xf32>
    %44 = arith.addf %39, %43 : vector<1x128xf32>
    %c0_13 = arith.constant 0 : index
    %c0_14 = arith.constant 0 : index
    %45 = vector.load %arg4[%c0_13, %c0_14] : memref<1x128xf32, #tpu.memory_space<vmem>>, vector<1x128xf32>
    tpu.vector_store %arg4[%c0_13, %c0_14], %44 {strides = array<i32>} : memref<1x128xf32, #tpu.memory_space<vmem>>, vector<1x128xf32>,
    %c0_15 = arith.constant 0 : index
    %c0_16 = arith.constant 0 : index
    %46 = vector.load %arg5[%c0_15, %c0_16] : memref<1x128xf32, #tpu.memory_space<vmem>>, vector<1x128xf32>
    %cst_17 = arith.constant 0.000000e+00 : f32
    %47 = vector.broadcast %cst_17 : f32 to vector<1x128xf32>
    %48 = arith.select %38, %6, %47 : vector<1x128xi1>, vector<1x128xf32>
    %cst_18 = arith.constant dense<0.000000e+00> : vector<128xf32>
    %49 = vector.multi_reduction <add>, %48, %cst_18 [0] : vector<1x128xf32> to vector<128xf32>
    %50 = vector.shape_cast %49 : vector<128xf32> to vector<1x128xf32>
    %51 = arith.addf %46, %50 : vector<1x128xf32>
    %c0_19 = arith.constant 0 : index
    %c0_20 = arith.constant 0 : index
    %52 = vector.load %arg5[%c0_19, %c0_20] : memref<1x128xf32, #tpu.memory_space<vmem>>, vector<1x128xf32>
    tpu.vector_store %arg5[%c0_19, %c0_20], %51 {strides = array<i32>} : memref<1x128xf32, #tpu.memory_space<vmem>>, vector<1x128xf32>,
    %c0_i32_21 = arith.constant 0 : i32
    %53 = arith.cmpi eq, %arg0, %c0_i32_21 : i32
    %54 = arith.extui %53 : i1 to i32
    %c0_i32_22 = arith.constant 0 : i32
    %55 = arith.cmpi ne, %54, %c0_i32_22 : i32
    scf.if %55 {
      %c0_23 = arith.constant 0 : index
      %c0_24 = arith.constant 0 : index
      %56 = vector.load %arg4[%c0_23, %c0_24] : memref<1x128xf32, #tpu.memory_space<vmem>>, vector<1x128xf32>
      %57 = vector.shape_cast %56 : vector<1x128xf32> to vector<1x1x128xf32>
      %cst_25 = arith.constant dense<0.000000e+00> : vector<1xf32>
      %58 = vector.multi_reduction <add>, %57, %cst_25 [1, 2] : vector<1x1x128xf32> to vector<1xf32>
      %59 = vector.shape_cast %58 : vector<1xf32> to vector<1x1x1xf32>
      %60 = vector.extract %59[0, 0, 0] : f32 from vector<1x1x1xf32>
      %cst_26 = arith.constant 2.400000e+01 : f32
      %61 = arith.divf %60, %cst_26 : f32
      %c0_27 = arith.constant 0 : index
      %c0_28 = arith.constant 0 : index
      %62 = vector.load %arg5[%c0_27, %c0_28] : memref<1x128xf32, #tpu.memory_space<vmem>>, vector<1x128xf32>
      %63 = vector.shape_cast %62 : vector<1x128xf32> to vector<1x1x128xf32>
      %cst_29 = arith.constant dense<0.000000e+00> : vector<1xf32>
      %64 = vector.multi_reduction <add>, %63, %cst_29 [1, 2] : vector<1x1x128xf32> to vector<1xf32>
      %65 = vector.shape_cast %64 : vector<1xf32> to vector<1x1x1xf32>
      %66 = vector.extract %65[0, 0, 0] : f32 from vector<1x1x1xf32>
      %cst_30 = arith.constant 3.200000e+01 : f32
      %67 = arith.divf %66, %cst_30 : f32
      %cst_31 = arith.constant 5.000000e+02 : f32
      %68 = arith.mulf %cst_31, %67 : f32
      %69 = arith.addf %61, %68 : f32
      %70 = tpu.iota {dimensions = array<i32: 0>} : vector<8x128xi32>
      %71 = tpu.iota {dimensions = array<i32: 1>} : vector<8x128xi32>
      %c0_i32_32 = arith.constant 0 : i32
      %72 = vector.broadcast %c0_i32_32 : i32 to vector<8x128xi32>
      %73 = arith.cmpi eq, %70, %72 : vector<8x128xi32>
      %c0_i32_33 = arith.constant 0 : i32
      %74 = vector.broadcast %c0_i32_33 : i32 to vector<8x128xi32>
      %75 = arith.cmpi eq, %71, %74 : vector<8x128xi32>
      %76 = arith.andi %73, %75 : vector<8x128xi1>
      %c1_i32_34 = arith.constant 1 : i32
      %77 = vector.broadcast %c1_i32_34 : i32 to vector<8x128xi32>
      %78 = arith.cmpi eq, %71, %77 : vector<8x128xi32>
      %79 = arith.andi %73, %78 : vector<8x128xi1>
      %c2_i32 = arith.constant 2 : i32
      %80 = vector.broadcast %c2_i32 : i32 to vector<8x128xi32>
      %81 = arith.cmpi eq, %71, %80 : vector<8x128xi32>
      %82 = arith.andi %73, %81 : vector<8x128xi1>
      %cst_35 = arith.constant 0.000000e+00 : f32
      %83 = vector.broadcast %67 : f32 to vector<8x128xf32>
      %84 = vector.broadcast %cst_35 : f32 to vector<8x128xf32>
      %85 = arith.select %82, %83, %84 : vector<8x128xi1>, vector<8x128xf32>
      %86 = vector.broadcast %61 : f32 to vector<8x128xf32>
      %87 = arith.select %79, %86, %85 : vector<8x128xi1>, vector<8x128xf32>
      %88 = vector.broadcast %69 : f32 to vector<8x128xf32>
      %89 = arith.select %76, %88, %87 : vector<8x128xi1>, vector<8x128xf32>
      %c0_36 = arith.constant 0 : index
      %c0_37 = arith.constant 0 : index
      %90 = vector.load %arg3[%c0_36, %c0_37] : memref<8x128xf32, #tpu.memory_space<vmem>>, vector<8x128xf32>
      tpu.vector_store %arg3[%c0_36, %c0_37], %89 {strides = array<i32>} : memref<8x128xf32, #tpu.memory_space<vmem>>, vector<8x128xf32>,
    } else {
    }
    return
  }
  func.func @transform_0(%arg0: i32) -> (i32, i32) {
    %c0_i32 = arith.constant 0 : i32
    %c0_i32_0 = arith.constant 0 : i32
    return %arg0, %c0_i32 : i32, i32
  }
  func.func @transform_1(%arg0: i32) -> (i32, i32) {
    %c0_i32 = arith.constant 0 : i32
    %c0_i32_0 = arith.constant 0 : i32
    return %arg0, %c0_i32 : i32, i32
  }
  func.func @transform_2(%arg0: i32) -> (i32, i32) {
    %c0_i32 = arith.constant 0 : i32
    %c0_i32_0 = arith.constant 0 : i32
    %c0_i32_1 = arith.constant 0 : i32
    return %c0_i32, %c0_i32_0 : i32, i32
  }
}

</mosaic_0001>

<bundles_post_ra>
// kernel: tpu_custom_call.1
= control target key start
LH: loop header
LB: loop body
LE: loop exit
PB: predicated region body
PF: predicated region fallthrough
CT: control target
= control target key end

     0   :  { %7 = vsyncpa [#allocation5], 0  ;;  %s264_s0 = inlined_call_operand.hbm [shape: f32[1,128], index: 0, kind: input, shape index: {}]   ;;  %s265_s1 = inlined_call_operand.vmem [shape: f32[1,128], index: 1, kind: input, shape index: {}]   ;;  %s266_s2 = inlined_call_operand.hbm [shape: f32[8,128], index: 2, kind: output, shape index: {}]  }
   0x1   :  { %8 = vsyncpa [#allocation6], 0  ;;  %s198_s9 = smov [#allocation4]   ;;  %s150_s13 = scalar_lea.hbm %s264_s0, 16 }
   0x2   :  { %s15_s10 = sshll.u32 %s198_s9, 4  ;;  %p151_p0 = scmp.ne.s32.totalorder %s264_s0, %s150_s13  ;;  %s16_s10 = int_to_ptr.vmem [resolvable:$true] %s15_s10 }
   0x3   :  { %p154_p1 = scmp.lt.u32.totalorder %s150_s13, %s264_s0 }
   0x5   :  { %p156_p2 = pnand %p154_p1, %p151_p0 }
   0x7   :  { %159 = shalt.err (!%p156_p2)
}
   0x8   :  { %s160_s18 = scalar_lea.vmem %s16_s10, 16  ;;  %s164_s19 = scalar_lea.vmem %s16_s10, 32 }
   0x9   :  { %p161_p3 = scmp.ne.s32.totalorder %s16_s10, %s160_s18  ;;  %p165_p4 = scmp.lt.s32.totalorder %s16_s10, %s16_s10 }
   0xa   :  { %p166_p5 = scmp.lt.s32.totalorder %s164_s19, %s160_s18 }
   0xc   :  { %p167_p6 = por %p166_p5, %p165_p4 }
   0xe   :  { %p168_p7 = pnand %p167_p6, %p161_p3 }
  0x10   :  { %171 = shalt.err (!%p168_p7)
}
  0x11   :  { %18 = dma.hbm_to_vmem [thread:$0]  %s264_s0, 16, %s16_s10, [#allocation5]  }
  0x12   :  { %194 = dma.done.wait [#allocation5], 16  }
  0x13   :  { %195 = vsyncadd [#allocation5], 4294967280  ;;  %v34_v0 = vlaneseq  ;;  %v199_v1 = vmov 0.0   ;;  %v200_v10 = vmov 0   ;;  %v30_v15 = vld [vmem:[#allocation4] sm:$0x1] }
  0x14   :  { %28 = vst [vmem:[#allocation2] sm:$0x1] %v199_v1  ;;  %29 = vst [vmem:[#allocation3] sm:$0x1] %v199_v1  ;;  %v31_v16 = vld [vmem:[%s265_s1] sm:$0x1] }
  0x15   :  { %v229_v2 = vshrl.u32 %v34_v0, 7  ;;  %v231_v3 = vand.u32 127, %v34_v0  ;;  %v32_v18 = vsub.f32 %v30_v15, %v31_v16  ;;  %vm80_vm10 = vcmask 1040384   ;;  %s201_s27 = smov [#allocation7]  }
  0x16   :  { %s130_s28 = sshll.u32 %s201_s27, 4  ;;  %s131_s28 = int_to_ptr.vmem [resolvable:$true] %s130_s28 }
  0x17   :  { %v40_v4 = vmul.u32 128, %v229_v2  ;;  %v33_v22 = vand.u32 2147483647, %v32_v18  ;;  %vm110_vm11 = vcmp.eq.s32.totalorder %v229_v2, 0  ;;  %vm115_vm12 = vcmp.eq.s32.totalorder %v231_v3, 2  ;;  %s172_s30 = scalar_lea.vmem %s131_s28, 128  ;;  %p177_p9 = scmp.lt.s32.totalorder %s131_s28, %s131_s28 }
  0x18   :  { %vm116_vm13 = vmand %vm110_vm11, %vm115_vm12  ;;  %vm113_vm14 = vcmp.eq.s32.totalorder %v231_v3, 1  ;;  %vm111_vm15 = vcmp.eq.s32.totalorder %v231_v3, 0  ;;  %p173_p8 = scmp.ne.s32.totalorder %s131_s28, %s172_s30  ;;  %p178_p10 = scmp.lt.s32.totalorder %s172_s30, %s172_s30 }
  0x19   :  { %v41_v5 = vadd.s32 %v40_v4, %v231_v3 }
  0x1a   :  { %p179_p11 = por %p178_p10, %p177_p9 }
  0x1b   :  { %v44_v6 = vsub.s32 0, %v41_v5  ;;  %vm43_vm1 = vcmp.lt.s32.totalorder %v41_v5, 0  ;;  %vm42_vm4 = vcmp.lt.s32.totalorder %v41_v5, 56  ;;  %v66_v24 = vld [vmem:[#allocation2] sm:$0x1] }
  0x1c   :  { %v71_v25 = vld [vmem:[#allocation3] sm:$0x1]  ;;  %p180_p12 = pnand %p179_p11, %p173_p8 }
  0x1d   :  { %v139_v7 = vmin.u32 %v44_v6, %v41_v5 }
  0x1f   :  { %v235_v8 = vmul.u32.u64.low 2454267026, %v139_v7  ;;  %v236_v9 = vmul.u32.u64.high 2454267026, %v139_v7, %v235_v8 }
  0x21   :  { %vm49_vm0 = vc.u32 %v235_v8, 2454267026 }
  0x22   :  { %v50_v11 = vsel %vm49_vm0, 1, %v200_v10  ;;  %vm114_vm0 = vmand %vm110_vm11, %vm113_vm14 }
  0x23   :  { %v51_v12 = vadd.s32 %v236_v9, %v50_v11 }
  0x25   :  { %v52_v13 = vshrl.u32 %v51_v12, 2 }
  0x27   :  { %v53_v14 = vmul.u32 7, %v52_v13 }
  0x29   :  { %v54_v17 = vsub.s32 %v139_v7, %v53_v14 }
  0x2b   :  { %v55_v19 = vsub.s32 0, %v54_v17 }
  0x2d   :  { %v56_v20 = vsel %vm43_vm1, %v55_v19, %v54_v17  ;;  %vm112_vm1 = vmand %vm110_vm11, %vm111_vm15 }
  0x2e   :  { %vm57_vm2 = vcmp.ne.s32.totalorder %v56_v20, 0  ;;  %vm58_vm3 = vcmp.lt.s32.totalorder %v56_v20, 0  ;;  %v60_v21 = vadd.s32 7, %v56_v20 }
  0x2f   :  { %vm59_vm5 = vmand %vm58_vm3, %vm57_vm2 }
  0x30   :  { %v61_v23 = vsel %vm59_vm5, %v60_v21, %v56_v20 }
  0x31   :  { %vm62_vm6 = vcmp.lt.s32.totalorder %v61_v23, 3  ;;  %vm64_vm7 = vcmp.ge.s32.totalorder %v61_v23, 3 }
  0x32   :  { %vm63_vm8 = vmand %vm42_vm4, %vm62_vm6 }
  0x33   :  { %v67_v26 = vsel %vm63_vm8, %v33_v22, 0.0  ;;  %vm65_vm9 = vmand %vm42_vm4, %vm64_vm7 }
  0x34   :  { %v69_v27 = vadd.f32 %v67_v26, %v66_v24  ;;  %v72_v28 = vsel %vm65_vm9, %v33_v22, 0.0 }
  0x35   :  { %v74_v29 = vadd.f32 %v72_v28, %v71_v25 }
  0x36   :  { %70 = vst [vmem:[#allocation2] sm:$0x1] %v69_v27 }
  0x37   :  { %75 = vst [vmem:[#allocation3] sm:$0x1] %v74_v29 }
  0x3d   :  { %v79_v30 = vld [vmem:[#allocation2] sm:$0x1] }
  0x3e   :  { %v81_v31 = vsel %vm80_vm10, %v79_v30, 0.0  ;;  %v94_v32 = vld [vmem:[#allocation3] sm:$0x1] }
  0x3f   :  { %82 = vadd.xlane.f32.xlu0 %v81_v31  ;;  %v95_v33 = vsel %vm80_vm10, %v94_v32, 0.0 }
  0x43   :  { %96 = vadd.xlane.f32.xlu0 %v95_v33 }
  0xcc   :  { %v83_v34 = vpop.xlane.xlu0 %82 }
  0xcd   :  { %v84_v35 = vrot.slane %v83_v34, 4 }
  0xcf   :  { %v85_v36 = vadd.f32 %v84_v35, %v83_v34 }
  0xd0   :  { %v97_v37 = vpop.xlane.xlu0 %96 }
  0xd1   :  { %v86_v38 = vrot.slane %v85_v36, 2  ;;  %v98_v39 = vrot.slane %v97_v37, 4 }
  0xd3   :  { %v99_v40 = vadd.f32 %v98_v39, %v97_v37  ;;  %v87_v41 = vadd.f32 %v86_v38, %v85_v36 }
  0xd5   :  { %v100_v42 = vrot.slane %v99_v40, 2  ;;  %v88_v43 = vrot.slane %v87_v41, 1 }
  0xd7   :  { %v101_v44 = vadd.f32 %v100_v42, %v99_v40  ;;  %v89_v45 = vadd.f32 %v88_v43, %v87_v41 }
  0xd9   :  { %142 = vpush %v89_v45  ;;  %v102_v46 = vrot.slane %v101_v44, 1 }
  0xdb   :  { %v103_v47 = vadd.f32 %v102_v46, %v101_v44 }
  0xdd   :  { %144 = vpush %v103_v47 }
 0x10a   :  { %s143_s1 = spop %142 }
 0x10b   :  { %s93_s25 = smul.f32 0.041666668, %s143_s1 }
 0x10d   :  { %v119_v50 = vstv %s93_s25 }
 0x10e   :  { %s145_s23 = spop %144 }
 0x10f   :  { %s107_s24 = smul.f32 0.03125, %s145_s23 }
 0x111   :  { %s108_s26 = smul.f32 500.0, %s107_s24  ;;  %v117_v48 = vstv %s107_s24 }
 0x112   :  { %v118_v49 = vsel %vm116_vm13, %v117_v48, 0.0 }
 0x113   :  { %s109_s29 = sadd.f32 %s108_s26, %s93_s25  ;;  %v120_v52 = vsel %vm114_vm0, %v119_v50, %v118_v49 }
 0x115   :  { %v121_v51 = vstv %s109_s29 }
 0x116   :  { %v122_v53 = vsel %vm112_vm1, %v121_v51, %v120_v52 }
 0x117   :  { %123 = vst [vmem:[#allocation7] sm:$0xff] %v122_v53 }
 0x118   :  { %183 = shalt.err (!%p180_p12)
}
 0x119   :  { %s184_s5 = scalar_lea.hbm %s266_s2, 128 }
 0x11a   :  { %p185_p13 = scmp.ne.s32.totalorder %s266_s2, %s184_s5  ;;  %p188_p0 = scmp.lt.u32.totalorder %s184_s5, %s266_s2 }
 0x11c   :  { %p190_p1 = pnand %p188_p0, %p185_p13 }
 0x11e   :  { %193 = shalt.err (!%p190_p1)
}
 0x11f   :  { %133 = dma.vmem_to_hbm [thread:$0]  %s131_s28, 128, %s266_s2, [#allocation6]  }
 0x120   :  { %196 = dma.done.wait [#allocation6], 128  }
 0x121   :  { %197 = vsyncadd [#allocation6], 4294967168 }
 0x122   :  { %137 = vsyncpa [#allocation5], 1 }
 0x123   :  { %138 = vsyncpa [#allocation6], 1 }

</bundles_post_ra>
